<compile_context>
chip_gen: v5e
topology: v5e:2x2
jax: 0.10.0
libtpu: 0.0.40
codegen_flags: <defaults>
</compile_context>

<pallas_src>
import functools
import math

import jax
import jax.numpy as jnp
from jax.experimental import pallas as pl
from jax.experimental.pallas import tpu as pltpu


# ----------------------------------------------------------------------------
# VMEM planning: per-generation budget + explicit vmem_limit_bytes.
# ----------------------------------------------------------------------------
def _vmem_plan():
    cap = 64 * 1024 * 1024                      # conservative fallback (v7x VMEM)
    try:
        info = pltpu.get_tpu_info()
        cap = int(getattr(info, "vmem_capacity_bytes", cap) or cap)
    except Exception:
        pass
    limit = int(cap * 0.75)                     # ~96 MiB on v5e/v6e, ~48 MiB on v7x
    budget = int(limit * 0.85)                  # headroom for compiler internal scratch
    return budget, limit


# ----------------------------------------------------------------------------
# Kernel 1: sparsity measurement  M = max(Q @ Ks^T) - sum(Q @ Ks^T) / L_K
# Grid: (BH-groups, L_Q tiles); each step handles a (g, tile_lq) slab of M.
# ----------------------------------------------------------------------------
def _mscore_kernel(q_ref, ks_ref, m_ref, *, inv_l_k):
    q = q_ref[...]                              # (g, tile_lq, D)
    ks = ks_ref[...]                            # (g, U, D)
    # (g, U, tile_lq): contract D on the last axis of both operands (no per-step
    # relayout).  L_Q lands on the lane axis, so the U-axis (sublane) reductions
    # below produce a lane-dense M row that stores unmasked.
    qk = jnp.einsum("gud,gld->gul", ks, q, preferred_element_type=jnp.float32)
    m = jnp.max(qk, axis=1) - jnp.sum(qk, axis=1) * inv_l_k     # (g, tile_lq) f32
    m_ref[...] = m[:, None, :].astype(m_ref.dtype)


def _choose_score_tiling(bh, l_q, u, d, itemsize, budget):
    """Prefer full L_Q and as many heads per step as fit; else tile L_Q."""
    def cost(g, t):
        io = 2 * g * ((t + u) * d * itemsize + t * 4)   # dbl-buffered Q, Ks, M tiles
        tmp = 2 * g * u * t * 4                         # f32 score block (+ slack)
        return io + tmp

    if cost(1, l_q) <= budget:
        g = 1
        for cand in range(2, bh + 1):
            if cost(cand, l_q) <= budget:
                g = cand
        if bh > 1 and pl.cdiv(bh, g) == 1:              # keep >= 2 steps (v7x: 2 TCs)
            g = pl.cdiv(bh, 2)
        return g, l_q
    # Fall back to tiling L_Q (one head per step); multiples of 128 keep the
    # lane-dense M store unmasked.
    tile = 128
    for cand in (8192, 4096, 2048, 1024, 512, 256, 128):
        if cand <= l_q and cost(1, cand) <= budget:
            tile = cand
            break
    return 1, min(tile, l_q)


def _prob_scores(q_flat, ks_flat, l_k, *, budget, vmem_limit):
    bh, l_q, d = q_flat.shape
    u = ks_flat.shape[1]
    g, tile_lq = _choose_score_tiling(bh, l_q, u, d, q_flat.dtype.itemsize, budget)
    grid = (pl.cdiv(bh, g), pl.cdiv(l_q, tile_lq))
    m3 = pl.pallas_call(
        functools.partial(_mscore_kernel, inv_l_k=1.0 / float(l_k)),
        out_shape=jax.ShapeDtypeStruct((bh, 1, l_q), jnp.float32),
        grid=grid,
        in_specs=[
            pl.BlockSpec((g, tile_lq, d), lambda i, j: (i, j, 0)),
            pl.BlockSpec((g, u, d), lambda i, j: (i, 0, 0)),
        ],
        out_specs=pl.BlockSpec((g, 1, tile_lq), lambda i, j: (i, 0, j)),
        compiler_params=pltpu.CompilerParams(
            dimension_semantics=("parallel", "parallel"),
            vmem_limit_bytes=vmem_limit),
    )(q_flat, ks_flat)
    return m3[:, 0, :]                                   # (BH, L_Q)


# ----------------------------------------------------------------------------
# Kernel 2: dense attention over the selected (top) queries.
# Grid iterates over groups of g heads; each step:
#   s = (Q_sel * scale) @ K^T ; p = softmax(s) ; out = p @ V
# ----------------------------------------------------------------------------
def _attn_kernel(q_ref, k_ref, v_ref, o_ref, *, scale):
    # Fold the softmax scale into Q: n_top*D mults instead of n_top*L_K.
    q = q_ref[...] * scale                      # (g, n_top, D), input dtype
    k = k_ref[...]                              # (g, L_K, D)
    v = v_ref[...]                              # (g, L_K, D)
    s = jnp.einsum("gqd,gkd->gqk", q, k,
                   preferred_element_type=jnp.float32)          # (g, n_top, L_K)
    # TODO(synk): mask_flag/attn_mask masked_fill branch not implemented
    # (forward default attn_mask=None never takes it in the reference).
    s_max = jnp.max(s, axis=-1, keepdims=True)
    p = jnp.exp(s - s_max)
    denom = jnp.sum(p, axis=-1, keepdims=True)
    p = p * pl.reciprocal(denom, approx=True)                   # EUP reciprocal
    # MXU inputs stay in the source dtype (bf16 stays bf16); f32 accumulation.
    ctx = jnp.einsum("gqk,gkd->gqd", p.astype(v.dtype), v,
                     preferred_element_type=jnp.float32)
    o_ref[...] = ctx.astype(o_ref.dtype)


def _choose_head_group(bh, n_top, l_k, d, in_isz, out_isz, budget):
    """Largest head group (no divisor requirement) whose per-step VMEM fits."""
    def cost(g):
        io = 2 * g * ((n_top + 2 * l_k) * d * in_isz + n_top * d * out_isz)
        tmp = 3 * g * n_top * l_k * 4                    # f32 softmax temporaries
        return io + tmp
    g = 1
    for cand in range(2, bh + 1):
        if cost(cand) <= budget:
            g = cand
    if bh > 1 and pl.cdiv(bh, g) == 1:                   # keep >= 2 steps (v7x: 2 TCs)
        g = pl.cdiv(bh, 2)
    return g


def _sparse_attention(q_sel, k_flat, v_flat, scale, out_dtype, *,
                      budget, vmem_limit):
    bh, n_top, d = q_sel.shape
    l_k = k_flat.shape[1]
    g = _choose_head_group(bh, n_top, l_k, d, q_sel.dtype.itemsize,
                           jnp.dtype(out_dtype).itemsize, budget)
    # TODO(synk): for very long L_K (notably on v7x's 64 MiB VMEM) an L_K grid
    # axis with online-softmax accumulators would keep g large; here the
    # chooser simply shrinks g instead.
    return pl.pallas_call(
        functools.partial(_attn_kernel, scale=float(scale)),
        out_shape=jax.ShapeDtypeStruct((bh, n_top, d), out_dtype),
        grid=(pl.cdiv(bh, g),),
        in_specs=[
            pl.BlockSpec((g, n_top, d), lambda i: (i, 0, 0)),
            pl.BlockSpec((g, l_k, d), lambda i: (i, 0, 0)),
            pl.BlockSpec((g, l_k, d), lambda i: (i, 0, 0)),
        ],
        out_specs=pl.BlockSpec((g, n_top, d), lambda i: (i, 0, 0)),
        compiler_params=pltpu.CompilerParams(
            dimension_semantics=("parallel",),
            vmem_limit_bytes=vmem_limit),
    )(q_sel, k_flat, v_flat)


# ----------------------------------------------------------------------------
# Module wrapper (no learnable parameters in the PyTorch module).
# ----------------------------------------------------------------------------
class ProbSparseAttention:
    def __init__(self, mask_flag=True, factor=5, scale=None,
                 attention_dropout=0.1, matmul_in_bf16=True):
        self.mask_flag = mask_flag
        self.factor = factor
        self.scale = scale
        # Dropout is identity at inference; kernels implement eval semantics.
        self.attention_dropout = attention_dropout
        self.matmul_in_bf16 = matmul_in_bf16

    def __call__(self, queries, keys, values, attn_mask=None, *, rng_key):
        if self.mask_flag and attn_mask is not None:
            # TODO(synk): attn_scores.masked_fill(attn_mask == 0, -1e9) branch
            # not implemented; the reference default (attn_mask=None) never
            # takes it.
            raise NotImplementedError("attn_mask not supported by this kernel")

        B, L_Q, H, D = queries.shape
        _, L_K, _, _ = keys.shape
        out_dtype = queries.dtype
        budget, vmem_limit = _vmem_plan()

        # (B, L, H, D) -> (B, H, L, D) -> (B*H, L, D)
        # TODO(synk): these relayouts (and the output one) are full HBM passes;
        # 4-D BlockSpecs over (B, H) could fold them into the kernels' DMAs.
        q = jnp.transpose(queries, (0, 2, 1, 3)).reshape(B * H, L_Q, D)
        k = jnp.transpose(keys, (0, 2, 1, 3)).reshape(B * H, L_K, D)
        v = jnp.transpose(values, (0, 2, 1, 3)).reshape(B * H, L_K, D)

        # bf16 MXU inputs (f32 accumulation stays via preferred_element_type);
        # also halves K/V DMA bytes.  Top-k ranking may shift marginally.
        if self.matmul_in_bf16 and q.dtype == jnp.float32:
            q = q.astype(jnp.bfloat16)
            k = k.astype(jnp.bfloat16)
            v = v.astype(jnp.bfloat16)

        scale = self.scale or 1.0 / math.sqrt(D)
        n_top_raw = max(int(L_Q * self.factor * math.log(L_K)), 1)
        # TODO(synk): the reference's M.topk(n_top) would raise when n_top > L_Q;
        # clamp to L_Q to keep the module runnable (dense over queries then).
        n_top = min(n_top_raw, L_Q)

        # _prob_QK: random key sample (torch.randperm equivalent — one shared
        # permutation across batch & heads, exactly like the reference),
        # sparsity scores (Pallas), top-k.
        u_part = min(n_top_raw, L_K)                         # sample_k = n_top
        perm = jax.random.permutation(rng_key, L_K)[:u_part]
        k_sample = jnp.take(k, perm, axis=1)                 # (BH, U, D)  glue
        m_scores = _prob_scores(q, k_sample, L_K,
                                budget=budget, vmem_limit=vmem_limit)
        _, idx = jax.lax.top_k(m_scores, n_top)              # (BH, n_top)

        # Pad the selected-query count to a sublane multiple by duplicating the
        # last index; duplicate indices scatter identical rows, so the result
        # is unchanged while the MXU M-dim / sublane tiles stay unragged.
        n_top_pad = -(-n_top // 8) * 8
        if n_top_pad != n_top:
            idx = jnp.concatenate(
                [idx, jnp.broadcast_to(idx[:, -1:], (B * H, n_top_pad - n_top))],
                axis=1)

        # Gather selected queries (glue), attend (Pallas), scatter back (glue).
        # TODO(synk): fusing this gather/scatter into the attention kernel via
        # scalar-prefetched indices would save extra HBM passes; kept in JAX.
        q_sel = jnp.take_along_axis(q, idx[:, :, None], axis=1)   # (BH, n_top', D)
        sel_ctx = _sparse_attention(q_sel, k, v, scale, out_dtype,
                                    budget=budget, vmem_limit=vmem_limit)

        # Reference's _get_initial_context is zeros; unselected rows stay zero.
        context = jnp.zeros((B * H, L_Q, D), dtype=out_dtype)
        bh_idx = jnp.arange(B * H)[:, None]
        context = context.at[bh_idx, idx].set(sel_ctx)

        # (B*H, L_Q, D) -> (B, H, L_Q, D) -> (B, L_Q, H, D)
        context = context.reshape(B, H, L_Q, D).transpose(0, 2, 1, 3)
        return context, None


if __name__ == "__main__":
    key = jax.random.PRNGKey(0)
    kq, kk, kv, kperm = jax.random.split(key, 4)

    B, L, H, D = 2, 8, 4, 32
    queries = jax.random.normal(kq, (B, L, H, D), dtype=jnp.float32)
    keys = jax.random.normal(kk, (B, L, H, D), dtype=jnp.float32)
    values = jax.random.normal(kv, (B, L, H, D), dtype=jnp.float32)

    attn = ProbSparseAttention(mask_flag=True, factor=5, scale=None,
                               attention_dropout=0.1)
    context, attn_weights = attn(queries, keys, values, attn_mask=None,
                                 rng_key=kperm)
    context = jax.block_until_ready(context)

    assert context.shape == (B, L, H, D)
    assert context.dtype == queries.dtype
    assert attn_weights is None
    assert bool(jnp.all(jnp.isfinite(context)))
    print("KERNEL_OK")
</pallas_src>

<mosaic_0001>
module attributes {stable_mosaic.version = 11 : i64} {
  func.func @_mscore_kernel(%arg0: i32, %arg1: i32, %arg2: memref<4x8x32xbf16, #tpu.memory_space<vmem>>, %arg3: memref<4x8x32xbf16, #tpu.memory_space<vmem>>, %arg4: memref<4x1x8xf32, #tpu.memory_space<vmem>>) attributes {dimension_semantics = [#tpu.dimension_semantics<parallel>, #tpu.dimension_semantics<parallel>], iteration_bounds = array<i64: 2, 1>, scalar_prefetch = 0 : i64, scratch_operands = 0 : i64, tpu.core_type = #tpu.core_type<tc>, window_params = [{transform_indices = @transform_0, window_bounds = array<i64: 4, 8, 32>}, {transform_indices = @transform_1, window_bounds = array<i64: 4, 8, 32>}, {transform_indices = @transform_2, window_bounds = array<i64: 4, 1, 8>}]} {
    %c0 = arith.constant 0 : index
    %c0_0 = arith.constant 0 : index
    %c0_1 = arith.constant 0 : index
    %0 = vector.load %arg2[%c0, %c0_0, %c0_1] : memref<4x8x32xbf16, #tpu.memory_space<vmem>>, vector<4x8x32xbf16>
    %c0_2 = arith.constant 0 : index
    %c0_3 = arith.constant 0 : index
    %c0_4 = arith.constant 0 : index
    %1 = vector.load %arg3[%c0_2, %c0_3, %c0_4] : memref<4x8x32xbf16, #tpu.memory_space<vmem>>, vector<4x8x32xbf16>
    "tpu.trace_start"() <{level = 10 : i32, message = "gud,gld->gul"}> : () -> ()
    %cst = arith.constant dense<0.000000e+00> : vector<4x8x8xf32>
    %2 = tpu.matmul %1, %0, %cst {dimension_numbers = #tpu.dot_dimension_numbers<[2], [2], [1], [1], [0, 0, 0, 1, 1, 1], [0], [0]>} : vector<4x8x32xbf16>, vector<4x8x32xbf16>, vector<4x8x8xf32> -> vector<4x8x8xf32>
    "tpu.trace_stop"() : () -> ()
    %cst_5 = arith.constant dense<0xFF800000> : vector<4x8xf32>
    %3 = vector.multi_reduction <maximumf>, %2, %cst_5 [1] : vector<4x8x8xf32> to vector<4x8xf32>
    %cst_6 = arith.constant dense<0.000000e+00> : vector<4x8xf32>
    %4 = vector.multi_reduction <add>, %2, %cst_6 [1] : vector<4x8x8xf32> to vector<4x8xf32>
    %cst_7 = arith.constant 1.250000e-01 : f32
    %5 = vector.broadcast %cst_7 : f32 to vector<4x8xf32>
    %6 = arith.mulf %4, %5 : vector<4x8xf32>
    %7 = arith.subf %3, %6 : vector<4x8xf32>
    %8 = vector.shape_cast %7 : vector<4x8xf32> to vector<4x1x8xf32>
    %c0_8 = arith.constant 0 : index
    %c0_9 = arith.constant 0 : index
    %c0_10 = arith.constant 0 : index
    %9 = vector.load %arg4[%c0_8, %c0_9, %c0_10] : memref<4x1x8xf32, #tpu.memory_space<vmem>>, vector<4x1x8xf32>
    tpu.vector_store %arg4[%c0_8, %c0_9, %c0_10], %8 {strides = array<i32>} : memref<4x1x8xf32, #tpu.memory_space<vmem>>, vector<4x1x8xf32>,
    return
  }
  func.func @transform_0(%arg0: i32, %arg1: i32) -> (i32, i32, i32) {
    %c0_i32 = arith.constant 0 : i32
    %c0_i32_0 = arith.constant 0 : i32
    return %arg0, %arg1, %c0_i32 : i32, i32, i32
  }
  func.func @transform_1(%arg0: i32, %arg1: i32) -> (i32, i32, i32) {
    %c0_i32 = arith.constant 0 : i32
    %c0_i32_0 = arith.constant 0 : i32
    %c0_i32_1 = arith.constant 0 : i32
    return %arg0, %c0_i32, %c0_i32_0 : i32, i32, i32
  }
  func.func @transform_2(%arg0: i32, %arg1: i32) -> (i32, i32, i32) {
    %c0_i32 = arith.constant 0 : i32
    %c0_i32_0 = arith.constant 0 : i32
    return %arg0, %c0_i32, %arg1 : i32, i32, i32
  }
}

</mosaic_0001>

<bundles_post_ra>
// kernel: tpu_custom_call.1
= control target key start
LH: loop header
LB: loop body
LE: loop exit
PB: predicated region body
PF: predicated region fallthrough
CT: control target
= control target key end

     0   :  { %7 = vsyncpa [#allocation3], 0  ;;  %s929_s0 = inlined_call_operand.hbm [shape: bf16[8,8,32], index: 0, kind: input, shape index: {}]   ;;  %s930_s1 = inlined_call_operand.hbm [shape: bf16[8,8,32], index: 1, kind: input, shape index: {}]   ;;  %s931_s2 = inlined_call_operand.hbm [shape: f32[8,1,8], index: 2, kind: output, shape index: {}]  }
   0x1   :  { %9 = vsyncpa [#allocation3 + $0x1], 0 }
   0x2   :  { %10 = vsyncpa [#allocation6], 0 }
   0x3   :  { %12 = vsyncpa [#allocation6 + $0x1], 0 }
   0x4   :  { %13 = vsyncpa [#allocation4], 0 }
   0x5   :  { %15 = vsyncpa [#allocation4 + $0x1], 0  ;;  %s767_s9 = smov 0   ;;  %s769_s10 = smov 0  }
   0x6   :  { %s771_s11 = smov 0   ;;  %s773_s12 = smov 0  }
   0x7   :  { %s775_s13 = smov 0   ;;  %s777_s14 = smov 0  }
   0x8 LB: > { %s505_s15 = sadd.s32 4294967295, %s746_s14   ;;  %s506_s16 = sadd.s32 4294967294, %s746_s14   ;;  %s746_s14 = sphi %s777_s14, %s21_s14   ;;  %s742_s13 = sphi %s775_s13, %s941_s13   ;;  %s738_s12 = sphi %s773_s12, %s940_s12   ;;  %s734_s11 = sphi %s771_s11, %s939_s11   ;;  %s730_s10 = sphi %s769_s10, %s938_s10   ;;  %s726_s9 = sphi %s767_s9, %s937_s9  }
   0x9   : > { %s33_s17 = sadd.s32 1, %s742_s13  ;;  %s42_s18 = sadd.s32 1, %s734_s11 }
   0xa   : > { %p35_p0 = scmp.ge.s32.totalorder %s33_s17, 2  ;;  %p49_p1 = scmp.ne.s32.totalorder %s734_s11, %s730_s10 }
   0xb   : > { %p50_p2 = scmp.eq.s32.totalorder %s746_s14, 0  ;;  %p55_p3 = scmp.ne.s32.totalorder %s730_s10, %s726_s9 }
   0xc   : > { %s943_s17 = smov (%p35_p0, %s33_s17), 0  ;;  %p56_p5 = scmp.eq.s32.totalorder %s505_s15, 0 }
   0xd   : > { %p808_p4 = por %p50_p2, %p49_p1  ;;  %s37_s20 = ssub.s32 %s742_s13, %s943_s17 }
   0xe   : > { %p107_p6 = scmp.eq.s32.totalorder %s505_s15, 1  ;;  %p40_p7 = scmp.eq.s32.totalorder %s37_s20, 0 }
   0xf   : > { %p814_p8 = por %p56_p5, %p55_p3  ;;  %p113_p10 = scmp.eq.s32.totalorder %s506_s16, 1 }
  0x10   : > { %p818_p9 = por %p107_p6, %p49_p1  ;;  %p508_p12 = scmp.ge.s32.totalorder %s746_s14, 2 }
  0x11   : > { %s823_s23 = scalar_select %p40_p7, %s734_s11, %s42_s18  }
  0x12   : > { %p825_p11 = por %p113_p10, %p55_p3  ;;  %p546_p13 = scmp.lt.s32.totalorder %s746_s14, 2 }
  0x13   : > { %s832_s25 = sand.u32 1, %s734_s11   ;;  %s527_s27 = sshll.u32 %s742_s13, 4 }
  0x14   : > { %s509_s26 = sshll.u32 %s832_s25, 4  ;;  %s143_s30 = scalar_lea.hbm %s929_s0, %s527_s27 }
  0x15   : > { %s137_s3 = scalar_lea.vmem [#allocation2], %s509_s26  ;;  %s144_s5 = sshll.u32 %s143_s30, 4  ;;  %s145_s5 = int_to_ptr.hbm [resolvable:$true] %s144_s5 }
  0x16   : > { %s146_s4 = sshll.u32 %s137_s3, 4  ;;  %p841_p0 = pnand %p546_p13, %p808_p4  ;;  %s147_s4 = int_to_ptr.vmem [resolvable:$true] %s146_s4 }
  0x17   : > { %p515_p1 = scmp.ge.s32.totalorder %s746_s14, 1  ;;  %s134_s7 = scalar_lea.sflag [#allocation3], %s832_s25 }
  0x18   : > { %s748_s8 = smov 64   ;;  %s749_s15 = smov 4  }
  0x19   : > { %538 = dma.hbm_to_vmem [thread:$0]  (!%p841_p0), %s145_s5, 256, %s147_s4, %s134_s7, %s748_s8, %s748_s8, %s749_s15  }
  0x1a   : > { %p176_p2 = scmp.lt.s32.totalorder %s746_s14, 3  ;;  %s165_s20 = scalar_lea.hbm %s930_s1, %s527_s27 }
  0x1b   : > { %s166_s28 = sshll.u32 %s165_s20, 4  ;;  %s160_s19 = scalar_lea.vmem [#allocation5], %s509_s26  ;;  %s167_s28 = int_to_ptr.hbm [resolvable:$true] %s166_s28 }
  0x1c   : > { %p177_p3 = pnand %p515_p1, %p176_p2  ;;  %s168_s29 = sshll.u32 %s160_s19, 4  ;;  %s169_s29 = int_to_ptr.vmem [resolvable:$true] %s168_s29 }
  0x1d   : > { %s157_s30 = scalar_lea.sflag [#allocation6], %s832_s25  ;;  %s857_s3 = sand.u32 (!%p177_p3), 1, %s730_s10  }
  0x1e   : > { %541 = dma.hbm_to_vmem [thread:$0]  (!%p841_p0), %s167_s28, 256, %s169_s29, %s157_s30, %s748_s8, %s748_s8, %s749_s15  }
  0x1f   : > { %180 = sbr.rel (%p177_p3) target bundleno = 205 (0xcd), region = 28  ;;  %s516_s4 = sshll.u32 (!%p177_p3), %s857_s3, 4 }
  0x20   : > { %s183_s5 = scalar_lea.sflag (!%p177_p3), [#allocation3], %s857_s3  ;;  %s186_s7 = scalar_lea.vmem (!%p177_p3), [#allocation2], %s516_s4 }
  0x24   : > { %713 = dma.done.wait (%p814_p8), %s183_s5, 256  }
  0x25   : > { %715 = vsyncadd (%p814_p8), %s183_s5, 4294967040  ;;  %s193_s25 = scalar_lea.sflag [#allocation6], %s857_s3  ;;  %s196_s26 = scalar_lea.vmem [#allocation5], %s516_s4 }
  0x26   : > { %717 = dma.done.wait (%p814_p8), %s193_s25, 256  }
  0x27   : > { %719 = vsyncadd (%p814_p8), %s193_s25, 4294967040  ;;  %vm235_vm0 = vcmask 261120   ;;  %v227_v0 = vld [vmem:[%s186_s7] sm:$0xf]  ;;  %v228_v1 = vld [vmem:[%s186_s7 + $0x4] sm:$0xf] }
  0x28   : > { %v229_v2 = vld [vmem:[%s186_s7 + $0x8] sm:$0xf]  ;;  %v240_v3 = vsel %vm235_vm0, %v227_v0, 0  ;;  %v259_v4 = vsel %vm235_vm0, %v228_v1, 0  ;;  %v230_v6 = vld [vmem:[%s186_s7 + $0xc] sm:$0xf] }
  0x29   : > { %v278_v5 = vsel %vm235_vm0, %v229_v2, 0  ;;  %249 = vmatpush.bf16.xpose.msra.mxu0 %v240_v3  ;;  %268 = vmatpush.bf16.xpose.msra.mxu1 %v259_v4  ;;  %v297_v7 = vsel %vm235_vm0, %v230_v6, 0  ;;  %v231_v8 = vld [vmem:[%s196_s26] sm:$0xf]  ;;  %v232_v9 = vld [vmem:[%s196_s26 + $0x4] sm:$0xf] }
  0x2a   : > { %287 = vmatpush.bf16.xpose.msra.mxu2 %v278_v5  ;;  %306 = vmatpush.bf16.xpose.msra.mxu3 %v297_v7  ;;  %v233_v10 = vld [vmem:[%s196_s26 + $0x8] sm:$0xf]  ;;  %v234_v11 = vld [vmem:[%s196_s26 + $0xc] sm:$0xf]  ;;  %vm312_vm1 = vcmask 64512   ;;  %s518_s21 = sshll.u32 %s857_s3, 2 }
  0x2b   : > { %vm377_vm2 = vcmask 57344   ;;  %s524_s27 = sshll.u32 %s738_s12, 2  ;;  %s222_s6 = scalar_lea.vmem [#allocation7], %s518_s21 }
  0x2c   : > { %s394_s16 = scalar_lea.hbm %s931_s2, %s524_s27  ;;  %s395_s12 = sshll.u32 %s222_s6, 4  ;;  %s396_s12 = int_to_ptr.vmem [resolvable:$true] %s395_s12 }
  0x2d   : > { %s397_s18 = sshll.u32 %s394_s16, 4  ;;  %s383_s20 = scalar_lea.sflag [#allocation4], %s857_s3  ;;  %s398_s18 = int_to_ptr.hbm [resolvable:$true] %s397_s18 }
  0x2e   : > { %s674_s28 = sshra.s32 %s398_s18, 4  ;;  %s680_s4 = scalar_lea.hbm %s931_s2, 8  ;;  %s675_s28 = int_to_ptr.hbm [resolvable:$true] %s674_s28 }
  0x2f   : > { %s676_s19 = scalar_lea.hbm %s675_s28, 4  ;;  %p681_p7 = scmp.lt.s32.totalorder %s675_s28, %s931_s2 }
  0x30   : > { %519 = vmatmul.msk.bf16.vlgmr.msra.gmra.mxu0 %vm235_vm0, %v231_v8  ;;  %520 = vmatmul.msk.bf16.vlgmr.msra.gmra.mxu1 %vm235_vm0, %v232_v9  ;;  %p677_p4 = scmp.ne.s32.totalorder %s675_s28, %s676_s19  ;;  %p682_p8 = scmp.lt.s32.totalorder %s680_s4, %s676_s19 }
  0x31   : > { %521 = vmatmul.msk.bf16.vlgmr.msra.gmra.mxu2 %vm235_vm0, %v233_v10  ;;  %522 = vmatmul.msk.bf16.vlgmr.msra.gmra.mxu3 %vm235_vm0, %v234_v11 }
  0x32   : > { %p678_p5 = pnand %p677_p4, %p818_p9  ;;  %p683_p10 = por %p682_p8, %p681_p7 }
  0x34   : > { %p679_p6 = pneg %p678_p5 }
  0x36   : > { %p684_p13 = pnand %p683_p10, %p679_p6 }
  0xad   : > { %v251_v12 = vpop.f32.mrf.mxu0  ;;  %v270_v13 = vpop.f32.mrf.mxu1 }
  0xae   : > { %v313_v14 = vsel %vm312_vm1, %v251_v12, -inf  ;;  %v341_v15 = vsel %vm312_vm1, %v251_v12, 0.0  ;;  %v320_v16 = vsel %vm312_vm1, %v270_v13, -inf  ;;  %v348_v17 = vsel %vm312_vm1, %v270_v13, 0.0 }
  0xaf   : > { %v314_v18 = vrot.slane %v313_v14, 4  ;;  %v342_v19 = vrot.slane %v341_v15, 4  ;;  %v321_v20 = vrot.slane %v320_v16, 4  ;;  %v349_v21 = vrot.slane %v348_v17, 4 }
  0xb1   : > { %v315_v22 = vmax.f32 %v313_v14, %v314_v18  ;;  %v343_v23 = vadd.f32 %v342_v19, %v341_v15  ;;  %v322_v24 = vmax.f32 %v320_v16, %v321_v20  ;;  %v350_v25 = vadd.f32 %v349_v21, %v348_v17 }
  0xb3   : > { %v316_v26 = vrot.slane %v315_v22, 2  ;;  %v344_v27 = vrot.slane %v343_v23, 2  ;;  %v323_v28 = vrot.slane %v322_v24, 2  ;;  %v351_v29 = vrot.slane %v350_v25, 2 }
  0xb4   : > { %v289_v30 = vpop.f32.mrf.mxu2  ;;  %v308_v31 = vpop.f32.mrf.mxu3 }
  0xb5   : > { %v317_v32 = vmax.f32 %v315_v22, %v316_v26  ;;  %v345_v33 = vadd.f32 %v344_v27, %v343_v23  ;;  %v324_v34 = vmax.f32 %v322_v24, %v323_v28  ;;  %v352_v35 = vadd.f32 %v351_v29, %v350_v25  ;;  %v253_v36 = vpop.f32.mrf.mxu0  ;;  %v272_v37 = vpop.f32.mrf.mxu1 }
  0xb6   : > { %v327_v38 = vsel %vm312_vm1, %v289_v30, -inf  ;;  %v355_v39 = vsel %vm312_vm1, %v289_v30, 0.0  ;;  %v334_v40 = vsel %vm312_vm1, %v308_v31, -inf  ;;  %v362_v41 = vsel %vm312_vm1, %v308_v31, 0.0 }
  0xb7   : > { %v318_v42 = vrot.slane %v317_v32, 1  ;;  %v346_v43 = vrot.slane %v345_v33, 1  ;;  %v325_v44 = vrot.slane %v324_v34, 1  ;;  %v353_v45 = vrot.slane %v352_v35, 1 }
  0xb8   : > { %v328_v46 = vrot.slane %v327_v38, 4  ;;  %v356_v47 = vrot.slane %v355_v39, 4  ;;  %v335_v48 = vrot.slane %v334_v40, 4  ;;  %v363_v49 = vrot.slane %v362_v41, 4 }
  0xb9   : > { %v347_v50 = vadd.f32 %v346_v43, %v345_v33  ;;  %v354_v51 = vadd.f32 %v353_v45, %v352_v35  ;;  %v319_v56 = vmax.f32 %v317_v32, %v318_v42  ;;  %v326_v58 = vmax.f32 %v324_v34, %v325_v44 }
  0xba   : > { %v329_v52 = vmax.f32 %v327_v38, %v328_v46  ;;  %v357_v53 = vadd.f32 %v356_v47, %v355_v39  ;;  %v336_v54 = vmax.f32 %v334_v40, %v335_v48  ;;  %v364_v55 = vadd.f32 %v363_v49, %v362_v41 }
  0xbb   : > { %v369_v57 = vmul.f32 0.125, %v347_v50  ;;  %v370_v59 = vmul.f32 0.125, %v354_v51 }
  0xbc   : > { %v330_v60 = vrot.slane %v329_v52, 2  ;;  %v358_v61 = vrot.slane %v357_v53, 2  ;;  %v337_v62 = vrot.slane %v336_v54, 2  ;;  %v365_v63 = vrot.slane %v364_v55, 2  ;;  %v291_v0 = vpop.f32.mrf.mxu2  ;;  %v310_v1 = vpop.f32.mrf.mxu3 }
  0xbd   : > { %v373_v2 = vsub.f32 %v319_v56, %v369_v57  ;;  %v374_v3 = vsub.f32 %v326_v58, %v370_v59 }
  0xbe   : > { %v331_v4 = vmax.f32 %v329_v52, %v330_v60  ;;  %v359_v5 = vadd.f32 %v358_v61, %v357_v53  ;;  %v338_v6 = vmax.f32 %v336_v54, %v337_v62  ;;  %v366_v7 = vadd.f32 %v365_v63, %v364_v55 }
  0xbf   : > { %378 = vst.msk [vmem:[%s222_s6] sm:$0x1] %vm377_vm2, %v373_v2 }
  0xc0   : > { %379 = vst.msk [vmem:[%s222_s6 + $0x1] sm:$0x1] %vm377_vm2, %v374_v3  ;;  %v332_v8 = vrot.slane %v331_v4, 1  ;;  %v360_v9 = vrot.slane %v359_v5, 1  ;;  %v339_v10 = vrot.slane %v338_v6, 1  ;;  %v367_v11 = vrot.slane %v366_v7, 1 }
  0xc2   : > { %v361_v12 = vadd.f32 %v360_v9, %v359_v5  ;;  %v368_v13 = vadd.f32 %v367_v11, %v366_v7  ;;  %v333_v14 = vmax.f32 %v331_v4, %v332_v8  ;;  %v340_v16 = vmax.f32 %v338_v6, %v339_v10 }
  0xc4   : > { %v371_v15 = vmul.f32 0.125, %v361_v12  ;;  %v372_v17 = vmul.f32 0.125, %v368_v13 }
  0xc6   : > { %v375_v18 = vsub.f32 %v333_v14, %v371_v15  ;;  %v376_v19 = vsub.f32 %v340_v16, %v372_v17 }
  0xc8   : > { %380 = vst.msk [vmem:[%s222_s6 + $0x2] sm:$0x1] %vm377_vm2, %v375_v18 }
  0xc9   : > { %381 = vst.msk [vmem:[%s222_s6 + $0x3] sm:$0x1] %vm377_vm2, %v376_v19 }
  0xca   : > { %687 = shalt.err (!%p684_p13)
}
  0xcb   : > { %s750_s3 = smov 16   ;;  %s751_s25 = smov 1  }
  0xcc   : > { %533 = dma.vmem_to_hbm [thread:$0]  (%p818_p9), %s396_s12, 64, %s398_s18, %s383_s20, %s750_s3, %s750_s3, %s751_s25  }
  0xcd PF: > { %s412_s26 = sand.u32 1, %s726_s9   ;;  %p543_p0 = pnand %p508_p12, %p825_p11 }
  0xce   : > { %s413_s21 = scalar_lea.sflag [#allocation4], %s412_s26 }
  0xcf   : > { %p544_p1 = pneg %p543_p0 }
  0xd1   : > { %721 = dma.done.wait (%p544_p1), %s413_s21, 64  }
  0xd2   : > { %723 = vsyncadd (%p544_p1), %s413_s21, 4294967232  ;;  %s21_s14 = sadd.s32 1, %s746_s14   ;;  %s937_s9 = smov %s730_s10 }
  0xd3   : > { %p18_p2 = scmp.ge.s32.totalorder %s21_s14, 4   ;;  %s938_s10 = smov %s734_s11 }
  0xd4   : > { %s939_s11 = smov %s823_s23  ;;  %s940_s12 = smov %s742_s13 }
  0xd5   : > { %s941_s13 = smov %s943_s17  ;;  %20 = sbr.rel (!%p18_p2) target bundleno = 8 (0x8), region = 86 }
  0xda   :  { %419 = vsyncpa [#allocation3], 1 }
  0xdb   :  { %421 = vsyncpa [#allocation3 + $0x1], 1 }
  0xdc   :  { %422 = vsyncpa [#allocation6], 1 }
  0xdd   :  { %424 = vsyncpa [#allocation6 + $0x1], 1 }
  0xde   :  { %425 = vsyncpa [#allocation4], 1 }
  0xdf   :  { %427 = vsyncpa [#allocation4 + $0x1], 1 }

</bundles_post_ra>
